<compile_context>
chip_gen: v6e
topology: v6e:2x2x1
jax: 0.10.0
libtpu: 0.0.40
codegen_flags: <defaults>
</compile_context>

<pallas_src>
import math
from functools import partial

import jax
import jax.numpy as jnp
from jax import lax
from jax.experimental import pallas as pl
from jax.experimental.pallas import tpu as pltpu


# ----------------------------- tiling helpers ------------------------------

def _sublane_tile(dim, target):
    """Tile for a second-to-last block dim: multiple of 8, or the full dim."""
    if dim <= target:
        return dim
    t = target
    while t >= 8 and dim % t:
        t //= 2
    return t if (t >= 8 and dim % t == 0) else dim


def _lane_tile(dim, target):
    """Tile for a last block dim: multiple of 128, or the full dim."""
    if dim <= target:
        return dim
    t = target
    while t >= 128 and dim % t:
        t //= 2
    return t if (t >= 128 and dim % t == 0) else dim


def _vmem_limit(block_bytes, scratch_bytes):
    # double-buffered blocks + scratch, 2x headroom; clamp to [32 MiB, 64 MiB]
    est = 2 * block_bytes + scratch_bytes
    return int(min(max(2 * est, 32 * 1024 * 1024), 64 * 1024 * 1024))


# ----------------------- generic tiled linear kernel -----------------------
# y = x @ W^T + b   with grid (M/tm, N/tn, K/tk); K innermost ("arbitrary").

def _linear_bias_kernel(x_ref, w_ref, b_ref, o_ref, acc_ref):
    @pl.when(pl.program_id(2) == 0)
    def _init():
        acc_ref[...] = jnp.zeros_like(acc_ref)

    acc_ref[...] += jnp.dot(x_ref[...], w_ref[...],
                            preferred_element_type=jnp.float32)

    @pl.when(pl.program_id(2) == pl.num_programs(2) - 1)
    def _store():
        o_ref[...] = (acc_ref[...] + b_ref[...]).astype(o_ref.dtype)


def linear_pallas(x2d, w_t, bias, out_dtype,
                  tm_target=256, tn_target=256, tk_target=512):
    """x2d: (M, K), w_t: (K, N) (already transposed), bias: (N,)."""
    M, K = x2d.shape
    Kw, N = w_t.shape
    assert K == Kw
    tm = _sublane_tile(M, tm_target)
    tn = _lane_tile(N, tn_target)
    tk = _lane_tile(K, tk_target)
    grid = (M // tm, N // tn, K // tk)

    bias2d = bias.reshape(1, N).astype(jnp.float32)

    in_bytes = x2d.dtype.itemsize
    out_bytes = jnp.dtype(out_dtype).itemsize
    block_bytes = (tm * tk + tk * tn) * in_bytes + tn * 4 + tm * tn * out_bytes
    limit = _vmem_limit(block_bytes, tm * tn * 4)

    return pl.pallas_call(
        _linear_bias_kernel,
        out_shape=jax.ShapeDtypeStruct((M, N), out_dtype),
        grid_spec=pltpu.PrefetchScalarGridSpec(
            num_scalar_prefetch=0,
            grid=grid,
            in_specs=[
                pl.BlockSpec((tm, tk), lambda i, j, k: (i, k)),   # x tile
                pl.BlockSpec((tk, tn), lambda i, j, k: (k, j)),   # W^T tile
                pl.BlockSpec((1, tn), lambda i, j, k: (0, j)),    # bias tile
            ],
            out_specs=pl.BlockSpec((tm, tn), lambda i, j, k: (i, j)),
            scratch_shapes=[pltpu.VMEM((tm, tn), jnp.float32)],
        ),
        compiler_params=pltpu.CompilerParams(
            dimension_semantics=("parallel", "parallel", "arbitrary"),
            vmem_limit_bytes=limit),
    )(x2d, w_t, bias2d)


# --------------------------- flash attention kernel ------------------------
# q, k, v: (B, H, S, dh).  grid = (B, S/tq, S/tk), kv axis innermost.

def _flash_attn_kernel(q_ref, k_ref, v_ref, o_ref, m_sc, l_sc, acc_sc,
                       *, tq, tk, scale, causal, approx_recip):
    qi = pl.program_id(1)
    ki = pl.program_id(2)

    @pl.when(ki == 0)
    def _init():
        m_sc[...] = jnp.full_like(m_sc, -jnp.inf)
        l_sc[...] = jnp.zeros_like(l_sc)
        acc_sc[...] = jnp.zeros_like(acc_sc)

    def _tile_update():
        q = q_ref[0]                                       # (H, tq, dh)
        k = k_ref[0]                                       # (H, tk, dh)
        v = v_ref[0]                                       # (H, tk, dh)
        # all heads in one batched MXU matmul, f32 accumulation
        s = jnp.einsum('hqd,hkd->hqk', q, k,
                       preferred_element_type=jnp.float32) * scale
        if causal:
            row_ids = qi * tq + lax.broadcasted_iota(jnp.int32, s.shape, 1)
            col_ids = ki * tk + lax.broadcasted_iota(jnp.int32, s.shape, 2)
            s = jnp.where(col_ids > row_ids, -jnp.inf, s)

        m_prev = m_sc[...]                                 # (H, tq, 1)
        m_new = jnp.maximum(m_prev, jnp.max(s, axis=-1, keepdims=True))
        alpha = jnp.exp(m_prev - m_new)
        p = jnp.exp(s - m_new)                             # f32 (H, tq, tk)
        l_sc[...] = alpha * l_sc[...] + jnp.sum(p, axis=-1, keepdims=True)
        acc_sc[...] = alpha * acc_sc[...] + jnp.einsum(
            'hqk,hkd->hqd', p.astype(v.dtype), v,
            preferred_element_type=jnp.float32)
        m_sc[...] = m_new

    if causal:
        # Skip KV tiles that lie entirely above the diagonal (fully masked).
        @pl.when(ki * tk <= qi * tq + (tq - 1))
        def _run():
            _tile_update()
    else:
        _tile_update()

    @pl.when(ki == pl.num_programs(2) - 1)
    def _finalize():
        inv_l = pl.reciprocal(l_sc[...], approx=approx_recip)
        o_ref[0] = (acc_sc[...] * inv_l).astype(o_ref.dtype)


def flash_attention_pallas(q, k, v, *, causal, scale, approx_recip,
                           tq_target=128, tk_target=128):
    B, H, S, dh = q.shape
    tq = _sublane_tile(S, tq_target)
    tk = _sublane_tile(S, tk_target)
    grid = (B, S // tq, S // tk)

    in_bytes = q.dtype.itemsize
    block_bytes = (2 * H * tq * dh + 2 * H * tk * dh) * in_bytes
    scratch_bytes = 4 * (2 * H * tq + H * tq * dh)
    limit = _vmem_limit(block_bytes, scratch_bytes)

    kernel = partial(_flash_attn_kernel, tq=tq, tk=tk, scale=scale,
                     causal=causal, approx_recip=approx_recip)

    return pl.pallas_call(
        kernel,
        out_shape=jax.ShapeDtypeStruct((B, H, S, dh), q.dtype),
        grid_spec=pltpu.PrefetchScalarGridSpec(
            num_scalar_prefetch=0,
            grid=grid,
            in_specs=[
                pl.BlockSpec((1, H, tq, dh), lambda b, i, j: (b, 0, i, 0)),
                pl.BlockSpec((1, H, tk, dh), lambda b, i, j: (b, 0, j, 0)),
                pl.BlockSpec((1, H, tk, dh), lambda b, i, j: (b, 0, j, 0)),
            ],
            out_specs=pl.BlockSpec((1, H, tq, dh), lambda b, i, j: (b, 0, i, 0)),
            scratch_shapes=[
                pltpu.VMEM((H, tq, 1), jnp.float32),   # running max
                pltpu.VMEM((H, tq, 1), jnp.float32),   # running sum
                pltpu.VMEM((H, tq, dh), jnp.float32),  # output accumulator
            ],
        ),
        compiler_params=pltpu.CompilerParams(
            dimension_semantics=("parallel", "parallel", "arbitrary"),
            vmem_limit_bytes=limit),
    )(q, k, v)


# ------------------------------ full module --------------------------------

def self_attention_pallas(x, w_in, b_in, w_out, b_out, n_heads,
                          causal_mask=False, compute_dtype=jnp.bfloat16):
    """x: (B, S, D). Weights in PyTorch layout: w_in (3D, D), w_out (D, D)."""
    B, S, D = x.shape
    assert D % n_heads == 0
    dh = D // n_heads
    cd = jnp.dtype(compute_dtype)

    x2d = x.reshape(B * S, D).astype(cd)
    w_in_t = jnp.transpose(w_in).astype(cd)       # (D, 3D)
    w_out_t = jnp.transpose(w_out).astype(cd)     # (D, D)

    # in_proj (tiled Pallas matmul + bias)
    qkv = linear_pallas(x2d, w_in_t, b_in, out_dtype=cd)          # (B*S, 3D)

    # split heads (wrapper-side layout plumbing): -> 3 x (B, H, S, dh)
    qkv = qkv.reshape(B, S, 3, n_heads, dh)
    qkv = jnp.transpose(qkv, (2, 0, 3, 1, 4))                     # (3,B,H,S,dh)
    q, k, v = qkv[0], qkv[1], qkv[2]

    # flash attention (Pallas)
    attn = flash_attention_pallas(
        q, k, v, causal=bool(causal_mask), scale=1.0 / math.sqrt(dh),
        approx_recip=(cd == jnp.bfloat16))                        # (B,H,S,dh)

    # merge heads and out_proj
    attn = jnp.transpose(attn, (0, 2, 1, 3)).reshape(B * S, D).astype(cd)
    out = linear_pallas(attn, w_out_t, b_out, out_dtype=x.dtype)  # (B*S, D)
    return out.reshape(B, S, D)


# ------------------------------- reference ---------------------------------

def self_attention_ref(x, w_in, b_in, w_out, b_out, n_heads, causal_mask=False):
    """Pure-JAX reference mirroring the PyTorch forward exactly."""
    B, S, D = x.shape
    d_head = D // n_heads
    qkv = x @ w_in.T + b_in                                  # (B, S, 3D)
    q, k, v = jnp.split(qkv, 3, axis=-1)

    def to_heads(t):
        return t.reshape(B, S, n_heads, d_head).transpose(0, 2, 1, 3)

    q, k, v = to_heads(q), to_heads(k), to_heads(v)
    w = q @ jnp.swapaxes(k, -1, -2)                          # (B, H, S, S)
    if causal_mask:
        mask = jnp.triu(jnp.ones((S, S), bool), k=1)
        w = jnp.where(mask, -jnp.inf, w)
    w = w / math.sqrt(d_head)
    w = jax.nn.softmax(w, axis=-1)
    out = w @ v                                              # (B, H, S, d_head)
    out = out.transpose(0, 2, 1, 3).reshape(B, S, D)
    return out @ w_out.T + b_out


if __name__ == "__main__":
    B, S, D = 2, 8, 32
    n_heads = 4

    key = jax.random.PRNGKey(0)
    kx, kwi, kbi, kwo, kbo = jax.random.split(key, 5)

    x = jax.random.normal(kx, (B, S, D), dtype=jnp.float32)
    bound = 1.0 / math.sqrt(D)
    w_in = jax.random.uniform(kwi, (3 * D, D), jnp.float32, -bound, bound)
    b_in = jax.random.uniform(kbi, (3 * D,), jnp.float32, -bound, bound)
    w_out = jax.random.uniform(kwo, (D, D), jnp.float32, -bound, bound)
    b_out = jax.random.uniform(kbo, (D,), jnp.float32, -bound, bound)

    ok = True
    for causal in (False, True):
        y_ref = self_attention_ref(x, w_in, b_in, w_out, b_out, n_heads,
                                   causal_mask=causal)

        # f32 compute path: tight check of the tiling / online-softmax logic.
        y32 = jax.block_until_ready(
            self_attention_pallas(x, w_in, b_in, w_out, b_out, n_heads,
                                  causal_mask=causal,
                                  compute_dtype=jnp.float32))
        if not jnp.allclose(y32, y_ref, atol=1e-3, rtol=1e-3):
            ok = False

        # bf16 MXU path (production default): expect small relative error.
        ybf = jax.block_until_ready(
            self_attention_pallas(x, w_in, b_in, w_out, b_out, n_heads,
                                  causal_mask=causal,
                                  compute_dtype=jnp.bfloat16))
        if not jnp.allclose(ybf.astype(jnp.float32), y_ref,
                            atol=5e-2, rtol=5e-2):
            ok = False

    print("KERNEL_OK" if ok else "KERNEL_MISMATCH")
</pallas_src>

<mosaic_0001>
module attributes {stable_mosaic.version = 11 : i64} {
  func.func @_linear_bias_kernel(%arg0: i32, %arg1: i32, %arg2: i32, %arg3: memref<16x32xf32, #tpu.memory_space<vmem>>, %arg4: memref<32x96xf32, #tpu.memory_space<vmem>>, %arg5: memref<1x96xf32, #tpu.memory_space<vmem>>, %arg6: memref<16x96xf32, #tpu.memory_space<vmem>>, %arg7: memref<16x96xf32, #tpu.memory_space<vmem>>) attributes {dimension_semantics = [#tpu.dimension_semantics<parallel>, #tpu.dimension_semantics<parallel>, #tpu.dimension_semantics<arbitrary>], iteration_bounds = array<i64: 1, 1, 1>, scalar_prefetch = 0 : i64, scratch_operands = 1 : i64, tpu.core_type = #tpu.core_type<tc>, window_params = [{transform_indices = @transform_0, window_bounds = array<i64: 16, 32>}, {transform_indices = @transform_1, window_bounds = array<i64: 32, 96>}, {transform_indices = @transform_2, window_bounds = array<i64: 1, 96>}, {transform_indices = @transform_3, window_bounds = array<i64: 16, 96>}]} {
    %c0_i32 = arith.constant 0 : i32
    %0 = arith.cmpi eq, %arg2, %c0_i32 : i32
    %1 = arith.extui %0 : i1 to i32
    %c0_i32_0 = arith.constant 0 : i32
    %2 = arith.cmpi ne, %1, %c0_i32_0 : i32
    scf.if %2 {
      %cst_10 = arith.constant 0.000000e+00 : f32
      %12 = vector.broadcast %cst_10 : f32 to vector<16x96xf32>
      %c0_11 = arith.constant 0 : index
      %c0_12 = arith.constant 0 : index
      %13 = vector.load %arg7[%c0_11, %c0_12] : memref<16x96xf32, #tpu.memory_space<vmem>>, vector<16x96xf32>
      tpu.vector_store %arg7[%c0_11, %c0_12], %12 {strides = array<i32>} : memref<16x96xf32, #tpu.memory_space<vmem>>, vector<16x96xf32>,
    } else {
    }
    %c0 = arith.constant 0 : index
    %c0_1 = arith.constant 0 : index
    %3 = vector.load %arg7[%c0, %c0_1] : memref<16x96xf32, #tpu.memory_space<vmem>>, vector<16x96xf32>
    %c0_2 = arith.constant 0 : index
    %c0_3 = arith.constant 0 : index
    %4 = vector.load %arg3[%c0_2, %c0_3] : memref<16x32xf32, #tpu.memory_space<vmem>>, vector<16x32xf32>
    %c0_4 = arith.constant 0 : index
    %c0_5 = arith.constant 0 : index
    %5 = vector.load %arg4[%c0_4, %c0_5] : memref<32x96xf32, #tpu.memory_space<vmem>>, vector<32x96xf32>
    %cst = arith.constant dense<0.000000e+00> : vector<16x96xf32>
    %6 = tpu.matmul %4, %5, %cst {dimension_numbers = #tpu.dot_dimension_numbers<[1], [0], [0], [1], [0, 0, 1, 1], [], []>} : vector<16x32xf32>, vector<32x96xf32>, vector<16x96xf32> -> vector<16x96xf32>
    %7 = arith.addf %3, %6 : vector<16x96xf32>
    %c0_6 = arith.constant 0 : index
    %c0_7 = arith.constant 0 : index
    %8 = vector.load %arg7[%c0_6, %c0_7] : memref<16x96xf32, #tpu.memory_space<vmem>>, vector<16x96xf32>
    tpu.vector_store %arg7[%c0_6, %c0_7], %7 {strides = array<i32>} : memref<16x96xf32, #tpu.memory_space<vmem>>, vector<16x96xf32>,
    %c0_i32_8 = arith.constant 0 : i32
    %9 = arith.cmpi eq, %arg2, %c0_i32_8 : i32
    %10 = arith.extui %9 : i1 to i32
    %c0_i32_9 = arith.constant 0 : i32
    %11 = arith.cmpi ne, %10, %c0_i32_9 : i32
    scf.if %11 {
      %c0_10 = arith.constant 0 : index
      %c0_11 = arith.constant 0 : index
      %12 = vector.load %arg7[%c0_10, %c0_11] : memref<16x96xf32, #tpu.memory_space<vmem>>, vector<16x96xf32>
      %c0_12 = arith.constant 0 : index
      %c0_13 = arith.constant 0 : index
      %13 = vector.load %arg5[%c0_12, %c0_13] : memref<1x96xf32, #tpu.memory_space<vmem>>, vector<1x96xf32>
      %14 = vector.broadcast %13 : vector<1x96xf32> to vector<16x96xf32>
      %15 = arith.addf %12, %14 : vector<16x96xf32>
      %c0_14 = arith.constant 0 : index
      %c0_15 = arith.constant 0 : index
      %16 = vector.load %arg6[%c0_14, %c0_15] : memref<16x96xf32, #tpu.memory_space<vmem>>, vector<16x96xf32>
      tpu.vector_store %arg6[%c0_14, %c0_15], %15 {strides = array<i32>} : memref<16x96xf32, #tpu.memory_space<vmem>>, vector<16x96xf32>,
    } else {
    }
    return
  }
  func.func @transform_0(%arg0: i32, %arg1: i32, %arg2: i32) -> (i32, i32) {
    %c0_i32 = arith.constant 0 : i32
    return %arg0, %arg2 : i32, i32
  }
  func.func @transform_1(%arg0: i32, %arg1: i32, %arg2: i32) -> (i32, i32) {
    %c0_i32 = arith.constant 0 : i32
    return %arg2, %arg1 : i32, i32
  }
  func.func @transform_2(%arg0: i32, %arg1: i32, %arg2: i32) -> (i32, i32) {
    %c0_i32 = arith.constant 0 : i32
    %c0_i32_0 = arith.constant 0 : i32
    return %c0_i32, %arg1 : i32, i32
  }
  func.func @transform_3(%arg0: i32, %arg1: i32, %arg2: i32) -> (i32, i32) {
    %c0_i32 = arith.constant 0 : i32
    return %arg0, %arg1 : i32, i32
  }
}

</mosaic_0001>

<bundles_post_ra>
// kernel: tpu_custom_call.1
= control target key start
LH: loop header
LB: loop body
LE: loop exit
PB: predicated region body
PF: predicated region fallthrough
CT: control target
= control target key end

     0   :  { %8 = vsyncpa [#allocation4], 0  ;;  %s326_s0 = inlined_call_operand.hbm [shape: f32[16,32], index: 0, kind: input, shape index: {}]   ;;  %s327_s1 = inlined_call_operand.hbm [shape: f32[32,96], index: 1, kind: input, shape index: {}]   ;;  %s328_s2 = inlined_call_operand.vmem [shape: f32[1,96], index: 2, kind: input, shape index: {}]   ;;  %s329_s3 = inlined_call_operand.hbm [shape: f32[16,96], index: 3, kind: output, shape index: {}]  }
   0x1   :  { %9 = vsyncpa [#allocation7], 0 }
   0x2   :  { %10 = vsyncpa [#allocation5], 0  ;;  %s271_s12 = smov [#allocation3]  }
   0x3   :  { %s16_s13 = sshll.u32 %s271_s12, 4  ;;  %s17_s13 = int_to_ptr.vmem [resolvable:$true] %s16_s13 }
   0x4   :  { %s213_s14 = scalar_lea.vmem %s17_s13, 256  ;;  %p218_p1 = scmp.lt.s32.totalorder %s17_s13, %s17_s13 }
   0x5   :  { %p214_p0 = scmp.ne.s32.totalorder %s17_s13, %s213_s14  ;;  %p219_p2 = scmp.lt.s32.totalorder %s213_s14, %s213_s14 }
   0x7   :  { %p220_p3 = por %p219_p2, %p218_p1 }
   0x9   :  { %p221_p4 = pnand %p220_p3, %p214_p0 }
   0xb   :  { %224 = shalt.err (!%p221_p4)
}
   0xc   :  { %s272_s15 = smov 128   ;;  %s273_s16 = smov 8  }
   0xd   :  { %22 = dma.hbm_to_vmem [thread:$0]  %s326_s0, 256, %s17_s13, [#allocation4], %s272_s15, %s272_s15, %s273_s16  }
   0xe   :  { %s274_s19 = smov [#allocation6]  }
   0xf   :  { %s28_s20 = sshll.u32 %s274_s19, 4  ;;  %s29_s20 = int_to_ptr.vmem [resolvable:$true] %s28_s20 }
  0x10   :  { %s233_s21 = scalar_lea.vmem %s29_s20, 512  ;;  %p238_p6 = scmp.lt.s32.totalorder %s29_s20, %s29_s20 }
  0x11   :  { %p234_p5 = scmp.ne.s32.totalorder %s29_s20, %s233_s21  ;;  %p239_p7 = scmp.lt.s32.totalorder %s233_s21, %s233_s21 }
  0x13   :  { %p240_p8 = por %p239_p7, %p238_p6 }
  0x15   :  { %p241_p9 = pnand %p240_p8, %p234_p5 }
  0x17   :  { %244 = shalt.err (!%p241_p9)
}
  0x18   :  { %34 = dma.hbm_to_vmem [thread:$0]  %s327_s1, 512, %s29_s20, [#allocation7], %s272_s15, %s272_s15, %s273_s16  }
  0x19   :  { %265 = dma.done.wait [#allocation4], 256  }
  0x1a   :  { %266 = vsyncadd [#allocation4], 4294967040 }
  0x1b   :  { %267 = dma.done.wait [#allocation7], 512  }
  0x1c   :  { %268 = vsyncadd [#allocation7], 4294966784  ;;  %vm47_vm0 = vcmask 785408   ;;  %v275_v0 = vmov 0.0   ;;  %vm58_vm1 = vcmask 261120   ;;  %v57_v1 = vld [vmem:[#allocation6 + $0x18] sm:$0xff] }
  0x1d   :  { %49 = vst.msk [vmem:[#allocation2 + $0x8] sm:$0xff] %vm47_vm0, %v275_v0  ;;  %48 = vst.msk [vmem:[#allocation2] sm:$0xff] %vm47_vm0, %v275_v0  ;;  %v56_v2 = vld [vmem:[#allocation6 + $0x10] sm:$0xff]  ;;  %188 = vmatprep.subr.mxu0 %v57_v1  ;;  %v55_v4 = vld [vmem:[#allocation6 + $0x8] sm:$0xff]  ;;  %s276_s24 = smov [#allocation8]  }
  0x1e   :  { %v52_v3 = vld [vmem:[#allocation3] sm:$0xff]  ;;  %189 = vmatpush3.msra.mxu0 %v57_v1  ;;  %v54_v5 = vld [vmem:[#allocation6] sm:$0xff]  ;;  %v53_v6 = vld [vmem:[#allocation3 + $0x8] sm:$0xff]  ;;  %s166_s25 = sshll.u32 %s276_s24, 4  ;;  %s167_s25 = int_to_ptr.vmem [resolvable:$true] %s166_s25 }
  0x1f   :  { %196 = vmatprep.mubr.msk.f32.mxu0 %vm58_vm1, %v52_v3  ;;  %190 = vmatprep.subr.mxu0 %v56_v2  ;;  %v181_v13 = vld [vmem:[%s328_s2] ss:$0 sm:$0xff]  ;;  %s245_s26 = scalar_lea.vmem %s167_s25, 256  ;;  %p250_p11 = scmp.lt.s32.totalorder %s167_s25, %s167_s25 }
  0x20   :  { %191 = vmatpush3.msra.mxu0 %v56_v2  ;;  %p246_p10 = scmp.ne.s32.totalorder %s167_s25, %s245_s26  ;;  %p251_p12 = scmp.lt.s32.totalorder %s245_s26, %s245_s26 }
  0x21   :  { %192 = vmatprep.subr.mxu0 %v55_v4 }
  0x22   :  { %193 = vmatpush3.msra.mxu0 %v55_v4  ;;  %p252_p13 = por %p251_p12, %p250_p11 }
  0x23   :  { %194 = vmatprep.subr.mxu0 %v54_v5 }
  0x24   :  { %195 = vmatpush3.msra.mxu0 %v54_v5  ;;  %v51_v7 = vld [vmem:[#allocation2 + $0x8] sm:$0xff]  ;;  %v50_v9 = vld [vmem:[#allocation2] sm:$0xff]  ;;  %p253_p0 = pnand %p252_p13, %p246_p10 }
  0x25   :  { %197 = vmatmul.mubr.msk.f32.vlgmr.msra.gmra.mxu0 %vm58_vm1, %v53_v6 }
  0xe5   :  { %v198_v8 = vpop.f32.mrf.mxu0 }
  0xe6   :  { %v141_v10 = vadd.f32 %v198_v8, %v51_v7 }
  0xe7   :  { %v131_v11 = vpop.f32.mrf.mxu0 }
  0xe8   :  { %144 = vst.msk [vmem:[#allocation2 + $0x8] sm:$0xff] %vm47_vm0, %v141_v10  ;;  %v140_v12 = vadd.f32 %v131_v11, %v50_v9 }
  0xea   :  { %143 = vst.msk [vmem:[#allocation2] sm:$0xff] %vm47_vm0, %v140_v12 }
  0xef   :  { %v149_v14 = vld [vmem:[#allocation2 + $0x8] sm:$0xff] }
  0xf0   :  { %v158_v15 = vadd.f32 %v181_v13, %v149_v14 }
  0xf1   :  { %v148_v16 = vld [vmem:[#allocation2] sm:$0xff] }
  0xf2   :  { %v157_v17 = vadd.f32 %v181_v13, %v148_v16  ;;  %160 = vst.msk [vmem:[#allocation8 + $0x8] sm:$0xff] %vm47_vm0, %v158_v15 }
  0xf4   :  { %159 = vst.msk [vmem:[#allocation8] sm:$0xff] %vm47_vm0, %v157_v17 }
  0xf5   :  { %256 = shalt.err (!%p253_p0)
}
  0xf6   :  { %172 = dma.vmem_to_hbm [thread:$0]  %s167_s25, 256, %s329_s3, [#allocation5], %s272_s15, %s272_s15, %s273_s16  }
  0xf7   :  { %269 = dma.done.wait [#allocation5], 256  }
  0xf8   :  { %270 = vsyncadd [#allocation5], 4294967040 }
  0xf9   :  { %176 = vsyncpa [#allocation4], 1 }
  0xfa   :  { %177 = vsyncpa [#allocation7], 1 }
  0xfb   :  { %178 = vsyncpa [#allocation5], 1 }

</bundles_post_ra>
